<compile_context>
chip_gen: v5e
topology: v5e:2x2
jax: 0.10.0
libtpu: 0.0.40
codegen_flags: <defaults>
</compile_context>

<pallas_src>
import functools

import jax
import jax.numpy as jnp
from jax.experimental import pallas as pl
from jax.experimental.pallas import tpu as pltpu

NEG_SLOPE = 0.2      # PyG GATConv default LeakyReLU slope
NEG_INF = -1e30


# ----------------------------- fused forward kernel -----------------------------
def _gat_encoder_kernel(x_ref, adj_ref, w1_ref, asrc1_ref, adst1_ref, b1_ref,
                        w2_ref, asrc2_ref, adst2_ref, b2_ref, pool_ref,
                        out_ref, *, num_heads, hidden):
    f32 = jnp.float32
    x = x_ref[...]                                              # (N, F_in)
    adj = adj_ref[...]                                          # (N, N)
    edge = adj > 0.0

    def masked_softmax(logits):
        # LeakyReLU -> mask to edges -> numerically-stable softmax over sources.
        leaky = jnp.where(logits > 0, logits, NEG_SLOPE * logits)
        masked = jnp.where(edge, leaky, NEG_INF)
        m = jnp.max(masked, axis=-1, keepdims=True)
        p = jnp.where(edge, jnp.exp(masked - m), 0.0)
        denom = jnp.sum(p, axis=-1, keepdims=True)
        # self-loops guarantee denom >= 1; guard anyway (review correctness note)
        denom = jnp.maximum(denom, 1e-20)
        return p * pl.reciprocal(denom, approx=True)            # EUP, not VPU divide

    # ---------------- layer 1: all heads in one MXU matmul ----------------
    h_all = jnp.dot(x, w1_ref[...], preferred_element_type=f32)         # (N, H*hid)
    # per-head attention logits via block-diagonal attention vectors (MXU, no XLU reduce)
    a_src = jnp.dot(h_all, asrc1_ref[...], preferred_element_type=f32)  # (N, H)
    a_dst = jnp.dot(h_all, adst1_ref[...], preferred_element_type=f32)  # (N, H)

    head_outs = []
    for h in range(num_heads):                                  # static unroll (H small)
        src_row = jnp.transpose(a_src[:, h:h + 1])              # (1, N) tiny transpose
        logits = a_dst[:, h:h + 1] + src_row                    # (N, N)
        attn = masked_softmax(logits)
        h_head = h_all[:, h * hidden:(h + 1) * hidden]          # (N, hid) static slice
        head_outs.append(jnp.dot(attn, h_head, preferred_element_type=f32))
    # concat=True is just the column order of the packed layer-1 output
    x1 = jnp.concatenate(head_outs, axis=-1) + b1_ref[...]      # (N, H*hid)
    # F.elu (alpha=1); exp-1 kept (known-good lowering; expm1 diff negligible here)
    x1 = jnp.where(x1 > 0, x1, jnp.exp(x1) - 1.0)

    # ---------------- layer 2: single head, concat=False ----------------
    h2 = jnp.dot(x1, w2_ref[...], preferred_element_type=f32)           # (N, F_out)
    s2 = jnp.dot(h2, asrc2_ref[...], preferred_element_type=f32)        # (N, 1)
    d2 = jnp.dot(h2, adst2_ref[...], preferred_element_type=f32)        # (N, 1)
    logits2 = d2 + jnp.transpose(s2)                                     # (N, N)
    attn2 = masked_softmax(logits2)
    x2 = jnp.dot(attn2, h2, preferred_element_type=f32) + b2_ref[...]   # (N, F_out)

    # ---------------- global_mean_pool folded into the epilogue ----------------
    out_ref[...] = jnp.dot(pool_ref[...], x2, preferred_element_type=f32)  # (B, F_out)


def gat_encoder_forward(params, x, adj, pool_mat):
    """Fused forward. x:(N,F_in), adj:(N,N) dense mask (target,source), pool_mat:(B,N)."""
    N, F_in = x.shape
    B = pool_mat.shape[0]
    H, _, F_hid = params["W1"].shape
    F_out = params["W2"].shape[-1]

    # ---- fold heads into packed matrices (tiny one-time wrapper-side reshapes) ----
    W1_all = jnp.transpose(params["W1"], (1, 0, 2)).reshape(F_in, H * F_hid)
    eyeH = jnp.eye(H, dtype=jnp.float32)
    # block-diagonal (H*F_hid, H): column h holds head-h attention vector
    Asrc1 = (params["a_src1"][:, 0, :, None] * eyeH[:, None, :]).reshape(H * F_hid, H)
    Adst1 = (params["a_dst1"][:, 0, :, None] * eyeH[:, None, :]).reshape(H * F_hid, H)
    b1 = params["b1"].reshape(1, H * F_hid)
    W2 = params["W2"][0]                                        # (H*F_hid, F_out)
    Asrc2 = jnp.transpose(params["a_src2"][0])                  # (F_out, 1)
    Adst2 = jnp.transpose(params["a_dst2"][0])                  # (F_out, 1)
    b2 = params["b2"].reshape(1, F_out)

    def full(shape):
        return pl.BlockSpec(shape, lambda i, _s=len(shape): (0,) * _s)

    kern = functools.partial(_gat_encoder_kernel, num_heads=H, hidden=F_hid)
    return pl.pallas_call(
        kern,
        out_shape=jax.ShapeDtypeStruct((B, F_out), jnp.float32),
        grid_spec=pltpu.PrefetchScalarGridSpec(
            num_scalar_prefetch=0,
            grid=(1,),
            in_specs=[
                full((N, F_in)),            # x
                full((N, N)),               # adjacency mask
                full((F_in, H * F_hid)),    # W1 packed (heads folded)
                full((H * F_hid, H)),       # att_src1 block-diag
                full((H * F_hid, H)),       # att_dst1 block-diag
                full((1, H * F_hid)),       # b1 (concat order)
                full((H * F_hid, F_out)),   # W2
                full((F_out, 1)),           # att_src2
                full((F_out, 1)),           # att_dst2
                full((1, F_out)),           # b2
                full((B, N)),               # mean-pool matrix
            ],
            out_specs=full((B, F_out)),
        ),
        compiler_params=pltpu.CompilerParams(
            dimension_semantics=("arbitrary",)),
    )(x, adj, W1_all, Asrc1, Adst1, b1, W2, Asrc2, Adst2, b2, pool_mat)
    # TODO(synk): for large N, switch the (N,N) softmax to a flash-style tiled
    # online-softmax grid (v7x 64 MiB VMEM) and shard row tiles across TCs.


# ------------------------------ pure-JAX reference ------------------------------
def gat_encoder_reference(params, x, adj, pool_mat):
    def layer(xin, W, a_src, a_dst, b, apply_elu):
        outs = []
        for h in range(W.shape[0]):
            hf = xin @ W[h]
            s = jnp.sum(hf * a_src[h], axis=-1, keepdims=True)
            d = jnp.sum(hf * a_dst[h], axis=-1, keepdims=True)
            logits = d + s.T
            leaky = jnp.where(logits > 0, logits, NEG_SLOPE * logits)
            masked = jnp.where(adj > 0, leaky, -jnp.inf)
            attn = jax.nn.softmax(masked, axis=-1)
            outs.append(attn @ hf + b[h])
        out = jnp.concatenate(outs, axis=-1)
        if apply_elu:
            out = jnp.where(out > 0, out, jnp.exp(out) - 1.0)
        return out

    x1 = layer(x, params["W1"], params["a_src1"], params["a_dst1"], params["b1"], True)
    x2 = layer(x1, params["W2"], params["a_src2"], params["a_dst2"], params["b2"], False)
    return pool_mat @ x2


# ----------------------------------- main ------------------------------------
if __name__ == "__main__":
    in_channels, hidden_channels, out_channels, num_heads = 8, 8, 8, 2
    N = 16          # nodes
    B = 2           # graphs in batch (8 nodes each)

    key = jax.random.PRNGKey(0)
    ks = jax.random.split(key, 9)
    scale = 0.1
    params = {
        # gat1: in -> hidden, H heads
        "W1": scale * jax.random.normal(ks[0], (num_heads, in_channels, hidden_channels), jnp.float32),
        "a_src1": scale * jax.random.normal(ks[1], (num_heads, 1, hidden_channels), jnp.float32),
        "a_dst1": scale * jax.random.normal(ks[2], (num_heads, 1, hidden_channels), jnp.float32),
        "b1": jnp.zeros((num_heads, 1, hidden_channels), jnp.float32),
        # gat2: hidden*H -> out, 1 head
        "W2": scale * jax.random.normal(ks[3], (1, hidden_channels * num_heads, out_channels), jnp.float32),
        "a_src2": scale * jax.random.normal(ks[4], (1, 1, out_channels), jnp.float32),
        "a_dst2": scale * jax.random.normal(ks[5], (1, 1, out_channels), jnp.float32),
        "b2": jnp.zeros((1, 1, out_channels), jnp.float32),
    }

    # node features
    x = jax.random.normal(ks[6], (N, in_channels), jnp.float32)

    # edge_index: bidirectional ring inside each of the two 8-node graphs
    src_list, dst_list = [], []
    for g in range(B):
        base = g * 8
        for i in range(8):
            a, b = base + i, base + (i + 1) % 8
            src_list += [a, b]
            dst_list += [b, a]
    edge_index = jnp.array([src_list, dst_list], dtype=jnp.int32)   # (2, 32)

    # batch assignment: first 8 nodes -> graph 0, last 8 -> graph 1
    batch = jnp.repeat(jnp.arange(B, dtype=jnp.int32), 8)           # (N,)

    # dense adjacency (adj[target, source] = 1) + self loops (PyG default)
    adj = jnp.zeros((N, N), jnp.float32).at[edge_index[1], edge_index[0]].set(1.0)
    adj = jnp.maximum(adj, jnp.eye(N, dtype=jnp.float32))

    # mean-pool matrix (B, N)
    one_hot = (batch[None, :] == jnp.arange(B)[:, None]).astype(jnp.float32)
    pool_mat = one_hot / jnp.sum(one_hot, axis=1, keepdims=True)

    out = gat_encoder_forward(params, x, adj, pool_mat)
    out = jax.block_until_ready(out)
    assert out.shape == (B, out_channels)
    assert bool(jnp.all(jnp.isfinite(out)))

    ref = gat_encoder_reference(params, x, adj, pool_mat)
    assert jnp.allclose(out, ref, rtol=2e-2, atol=2e-3), (out, ref)

    print("KERNEL_OK")
</pallas_src>

<mosaic_0001>
module attributes {stable_mosaic.version = 11 : i64} {
  func.func @_gat_encoder_kernel(%arg0: i32, %arg1: memref<16x8xf32, #tpu.memory_space<vmem>>, %arg2: memref<16x16xf32, #tpu.memory_space<vmem>>, %arg3: memref<8x16xf32, #tpu.memory_space<vmem>>, %arg4: memref<16x2xf32, #tpu.memory_space<vmem>>, %arg5: memref<16x2xf32, #tpu.memory_space<vmem>>, %arg6: memref<1x16xf32, #tpu.memory_space<vmem>>, %arg7: memref<16x8xf32, #tpu.memory_space<vmem>>, %arg8: memref<8x1xf32, #tpu.memory_space<vmem>>, %arg9: memref<8x1xf32, #tpu.memory_space<vmem>>, %arg10: memref<1x8xf32, #tpu.memory_space<vmem>>, %arg11: memref<2x16xf32, #tpu.memory_space<vmem>>, %arg12: memref<2x8xf32, #tpu.memory_space<vmem>>) attributes {dimension_semantics = [#tpu.dimension_semantics<arbitrary>], iteration_bounds = array<i64: 1>, scalar_prefetch = 0 : i64, scratch_operands = 0 : i64, tpu.core_type = #tpu.core_type<tc>, window_params = [{pipeline_mode = #tpu.pipeline_mode<synchronous>, transform_indices = @transform_0, window_bounds = array<i64: 16, 8>}, {pipeline_mode = #tpu.pipeline_mode<synchronous>, transform_indices = @transform_1, window_bounds = array<i64: 16, 16>}, {pipeline_mode = #tpu.pipeline_mode<synchronous>, transform_indices = @transform_2, window_bounds = array<i64: 8, 16>}, {pipeline_mode = #tpu.pipeline_mode<synchronous>, transform_indices = @transform_3, window_bounds = array<i64: 16, 2>}, {pipeline_mode = #tpu.pipeline_mode<synchronous>, transform_indices = @transform_4, window_bounds = array<i64: 16, 2>}, {pipeline_mode = #tpu.pipeline_mode<synchronous>, transform_indices = @transform_5, window_bounds = array<i64: 1, 16>}, {pipeline_mode = #tpu.pipeline_mode<synchronous>, transform_indices = @transform_6, window_bounds = array<i64: 16, 8>}, {pipeline_mode = #tpu.pipeline_mode<synchronous>, transform_indices = @transform_7, window_bounds = array<i64: 8, 1>}, {pipeline_mode = #tpu.pipeline_mode<synchronous>, transform_indices = @transform_8, window_bounds = array<i64: 8, 1>}, {pipeline_mode = #tpu.pipeline_mode<synchronous>, transform_indices = @transform_9, window_bounds = array<i64: 1, 8>}, {pipeline_mode = #tpu.pipeline_mode<synchronous>, transform_indices = @transform_10, window_bounds = array<i64: 2, 16>}, {pipeline_mode = #tpu.pipeline_mode<synchronous>, transform_indices = @transform_11, window_bounds = array<i64: 2, 8>}]} {
    %c0 = arith.constant 0 : index
    %c0_0 = arith.constant 0 : index
    %0 = vector.load %arg1[%c0, %c0_0] : memref<16x8xf32, #tpu.memory_space<vmem>>, vector<16x8xf32>
    %c0_1 = arith.constant 0 : index
    %c0_2 = arith.constant 0 : index
    %1 = vector.load %arg2[%c0_1, %c0_2] : memref<16x16xf32, #tpu.memory_space<vmem>>, vector<16x16xf32>
    %cst = arith.constant 0.000000e+00 : f32
    %2 = vector.broadcast %cst : f32 to vector<16x16xf32>
    %3 = arith.cmpf ogt, %1, %2 : vector<16x16xf32>
    %c0_3 = arith.constant 0 : index
    %c0_4 = arith.constant 0 : index
    %4 = vector.load %arg3[%c0_3, %c0_4] : memref<8x16xf32, #tpu.memory_space<vmem>>, vector<8x16xf32>
    %cst_5 = arith.constant dense<0.000000e+00> : vector<16x16xf32>
    %5 = tpu.matmul %0, %4, %cst_5 {dimension_numbers = #tpu.dot_dimension_numbers<[1], [0], [0], [1], [0, 0, 1, 1], [], []>} : vector<16x8xf32>, vector<8x16xf32>, vector<16x16xf32> -> vector<16x16xf32>
    %c0_6 = arith.constant 0 : index
    %c0_7 = arith.constant 0 : index
    %6 = vector.load %arg4[%c0_6, %c0_7] : memref<16x2xf32, #tpu.memory_space<vmem>>, vector<16x2xf32>
    %cst_8 = arith.constant dense<0.000000e+00> : vector<16x2xf32>
    %7 = tpu.matmul %5, %6, %cst_8 {dimension_numbers = #tpu.dot_dimension_numbers<[1], [0], [0], [1], [0, 0, 1, 1], [], []>} : vector<16x16xf32>, vector<16x2xf32>, vector<16x2xf32> -> vector<16x2xf32>
    %c0_9 = arith.constant 0 : index
    %c0_10 = arith.constant 0 : index
    %8 = vector.load %arg5[%c0_9, %c0_10] : memref<16x2xf32, #tpu.memory_space<vmem>>, vector<16x2xf32>
    %cst_11 = arith.constant dense<0.000000e+00> : vector<16x2xf32>
    %9 = tpu.matmul %5, %8, %cst_11 {dimension_numbers = #tpu.dot_dimension_numbers<[1], [0], [0], [1], [0, 0, 1, 1], [], []>} : vector<16x16xf32>, vector<16x2xf32>, vector<16x2xf32> -> vector<16x2xf32>
    %10 = vector.extract_strided_slice %7 {offsets = [0, 0], sizes = [16, 1], strides = [1, 1]} : vector<16x2xf32> to vector<16x1xf32>
    %11 = tpu.transpose %10, [1, 0] : vector<16x1xf32> -> vector<1x16xf32>
    %12 = vector.extract_strided_slice %9 {offsets = [0, 0], sizes = [16, 1], strides = [1, 1]} : vector<16x2xf32> to vector<16x1xf32>
    %13 = vector.broadcast %12 : vector<16x1xf32> to vector<16x16xf32>
    %14 = vector.broadcast %11 : vector<1x16xf32> to vector<16x16xf32>
    %15 = arith.addf %13, %14 : vector<16x16xf32>
    %cst_12 = arith.constant 0.000000e+00 : f32
    %16 = vector.broadcast %cst_12 : f32 to vector<16x16xf32>
    %17 = arith.cmpf ogt, %15, %16 : vector<16x16xf32>
    %cst_13 = arith.constant 2.000000e-01 : f32
    %18 = vector.broadcast %cst_13 : f32 to vector<16x16xf32>
    %19 = arith.mulf %18, %15 : vector<16x16xf32>
    %20 = arith.select %17, %15, %19 : vector<16x16xi1>, vector<16x16xf32>
    %cst_14 = arith.constant -1.000000e+30 : f32
    %21 = vector.broadcast %cst_14 : f32 to vector<16x16xf32>
    %22 = arith.select %3, %20, %21 : vector<16x16xi1>, vector<16x16xf32>
    %cst_15 = arith.constant dense<0xFF800000> : vector<16xf32>
    %23 = vector.multi_reduction <maximumf>, %22, %cst_15 [1] : vector<16x16xf32> to vector<16xf32>
    %24 = vector.shape_cast %23 : vector<16xf32> to vector<16x1xf32>
    %25 = vector.broadcast %24 : vector<16x1xf32> to vector<16x16xf32>
    %26 = arith.subf %22, %25 : vector<16x16xf32>
    %27 = math.exp %26 : vector<16x16xf32>
    %cst_16 = arith.constant 0.000000e+00 : f32
    %28 = vector.broadcast %cst_16 : f32 to vector<16x16xf32>
    %29 = arith.select %3, %27, %28 : vector<16x16xi1>, vector<16x16xf32>
    %cst_17 = arith.constant dense<0.000000e+00> : vector<16xf32>
    %30 = vector.multi_reduction <add>, %29, %cst_17 [1] : vector<16x16xf32> to vector<16xf32>
    %31 = vector.shape_cast %30 : vector<16xf32> to vector<16x1xf32>
    %cst_18 = arith.constant 9.99999968E-21 : f32
    %32 = vector.broadcast %cst_18 : f32 to vector<16x1xf32>
    %33 = arith.maximumf %31, %32 : vector<16x1xf32>
    %34 = tpu.reciprocal %33 {approx = true} : vector<16x1xf32> -> vector<16x1xf32>
    %35 = vector.broadcast %34 : vector<16x1xf32> to vector<16x16xf32>
    %36 = arith.mulf %29, %35 : vector<16x16xf32>
    %37 = vector.extract_strided_slice %5 {offsets = [0, 0], sizes = [16, 8], strides = [1, 1]} : vector<16x16xf32> to vector<16x8xf32>
    %cst_19 = arith.constant dense<0.000000e+00> : vector<16x8xf32>
    %38 = tpu.matmul %36, %37, %cst_19 {dimension_numbers = #tpu.dot_dimension_numbers<[1], [0], [0], [1], [0, 0, 1, 1], [], []>} : vector<16x16xf32>, vector<16x8xf32>, vector<16x8xf32> -> vector<16x8xf32>
    %39 = vector.extract_strided_slice %7 {offsets = [0, 1], sizes = [16, 1], strides = [1, 1]} : vector<16x2xf32> to vector<16x1xf32>
    %40 = tpu.transpose %39, [1, 0] : vector<16x1xf32> -> vector<1x16xf32>
    %41 = vector.extract_strided_slice %9 {offsets = [0, 1], sizes = [16, 1], strides = [1, 1]} : vector<16x2xf32> to vector<16x1xf32>
    %42 = vector.broadcast %41 : vector<16x1xf32> to vector<16x16xf32>
    %43 = vector.broadcast %40 : vector<1x16xf32> to vector<16x16xf32>
    %44 = arith.addf %42, %43 : vector<16x16xf32>
    %cst_20 = arith.constant 0.000000e+00 : f32
    %45 = vector.broadcast %cst_20 : f32 to vector<16x16xf32>
    %46 = arith.cmpf ogt, %44, %45 : vector<16x16xf32>
    %cst_21 = arith.constant 2.000000e-01 : f32
    %47 = vector.broadcast %cst_21 : f32 to vector<16x16xf32>
    %48 = arith.mulf %47, %44 : vector<16x16xf32>
    %49 = arith.select %46, %44, %48 : vector<16x16xi1>, vector<16x16xf32>
    %cst_22 = arith.constant -1.000000e+30 : f32
    %50 = vector.broadcast %cst_22 : f32 to vector<16x16xf32>
    %51 = arith.select %3, %49, %50 : vector<16x16xi1>, vector<16x16xf32>
    %cst_23 = arith.constant dense<0xFF800000> : vector<16xf32>
    %52 = vector.multi_reduction <maximumf>, %51, %cst_23 [1] : vector<16x16xf32> to vector<16xf32>
    %53 = vector.shape_cast %52 : vector<16xf32> to vector<16x1xf32>
    %54 = vector.broadcast %53 : vector<16x1xf32> to vector<16x16xf32>
    %55 = arith.subf %51, %54 : vector<16x16xf32>
    %56 = math.exp %55 : vector<16x16xf32>
    %cst_24 = arith.constant 0.000000e+00 : f32
    %57 = vector.broadcast %cst_24 : f32 to vector<16x16xf32>
    %58 = arith.select %3, %56, %57 : vector<16x16xi1>, vector<16x16xf32>
    %cst_25 = arith.constant dense<0.000000e+00> : vector<16xf32>
    %59 = vector.multi_reduction <add>, %58, %cst_25 [1] : vector<16x16xf32> to vector<16xf32>
    %60 = vector.shape_cast %59 : vector<16xf32> to vector<16x1xf32>
    %cst_26 = arith.constant 9.99999968E-21 : f32
    %61 = vector.broadcast %cst_26 : f32 to vector<16x1xf32>
    %62 = arith.maximumf %60, %61 : vector<16x1xf32>
    %63 = tpu.reciprocal %62 {approx = true} : vector<16x1xf32> -> vector<16x1xf32>
    %64 = vector.broadcast %63 : vector<16x1xf32> to vector<16x16xf32>
    %65 = arith.mulf %58, %64 : vector<16x16xf32>
    %66 = vector.extract_strided_slice %5 {offsets = [0, 8], sizes = [16, 8], strides = [1, 1]} : vector<16x16xf32> to vector<16x8xf32>
    %cst_27 = arith.constant dense<0.000000e+00> : vector<16x8xf32>
    %67 = tpu.matmul %65, %66, %cst_27 {dimension_numbers = #tpu.dot_dimension_numbers<[1], [0], [0], [1], [0, 0, 1, 1], [], []>} : vector<16x16xf32>, vector<16x8xf32>, vector<16x8xf32> -> vector<16x8xf32>
    %68 = tpu.concatenate %38, %67 in 1 : vector<16x8xf32>, vector<16x8xf32> -> vector<16x16xf32>
    %c0_28 = arith.constant 0 : index
    %c0_29 = arith.constant 0 : index
    %69 = vector.load %arg6[%c0_28, %c0_29] : memref<1x16xf32, #tpu.memory_space<vmem>>, vector<1x16xf32>
    %70 = vector.broadcast %69 : vector<1x16xf32> to vector<16x16xf32>
    %71 = arith.addf %68, %70 : vector<16x16xf32>
    %cst_30 = arith.constant 0.000000e+00 : f32
    %72 = vector.broadcast %cst_30 : f32 to vector<16x16xf32>
    %73 = arith.cmpf ogt, %71, %72 : vector<16x16xf32>
    %74 = math.exp %71 : vector<16x16xf32>
    %cst_31 = arith.constant 1.000000e+00 : f32
    %75 = vector.broadcast %cst_31 : f32 to vector<16x16xf32>
    %76 = arith.subf %74, %75 : vector<16x16xf32>
    %77 = arith.select %73, %71, %76 : vector<16x16xi1>, vector<16x16xf32>
    %c0_32 = arith.constant 0 : index
    %c0_33 = arith.constant 0 : index
    %78 = vector.load %arg7[%c0_32, %c0_33] : memref<16x8xf32, #tpu.memory_space<vmem>>, vector<16x8xf32>
    %cst_34 = arith.constant dense<0.000000e+00> : vector<16x8xf32>
    %79 = tpu.matmul %77, %78, %cst_34 {dimension_numbers = #tpu.dot_dimension_numbers<[1], [0], [0], [1], [0, 0, 1, 1], [], []>} : vector<16x16xf32>, vector<16x8xf32>, vector<16x8xf32> -> vector<16x8xf32>
    %c0_35 = arith.constant 0 : index
    %c0_36 = arith.constant 0 : index
    %80 = vector.load %arg8[%c0_35, %c0_36] : memref<8x1xf32, #tpu.memory_space<vmem>>, vector<8x1xf32>
    %cst_37 = arith.constant dense<0.000000e+00> : vector<16x1xf32>
    %81 = tpu.matmul %79, %80, %cst_37 {dimension_numbers = #tpu.dot_dimension_numbers<[1], [0], [0], [1], [0, 0, 1, 1], [], []>} : vector<16x8xf32>, vector<8x1xf32>, vector<16x1xf32> -> vector<16x1xf32>
    %c0_38 = arith.constant 0 : index
    %c0_39 = arith.constant 0 : index
    %82 = vector.load %arg9[%c0_38, %c0_39] : memref<8x1xf32, #tpu.memory_space<vmem>>, vector<8x1xf32>
    %cst_40 = arith.constant dense<0.000000e+00> : vector<16x1xf32>
    %83 = tpu.matmul %79, %82, %cst_40 {dimension_numbers = #tpu.dot_dimension_numbers<[1], [0], [0], [1], [0, 0, 1, 1], [], []>} : vector<16x8xf32>, vector<8x1xf32>, vector<16x1xf32> -> vector<16x1xf32>
    %84 = tpu.transpose %81, [1, 0] : vector<16x1xf32> -> vector<1x16xf32>
    %85 = vector.broadcast %83 : vector<16x1xf32> to vector<16x16xf32>
    %86 = vector.broadcast %84 : vector<1x16xf32> to vector<16x16xf32>
    %87 = arith.addf %85, %86 : vector<16x16xf32>
    %cst_41 = arith.constant 0.000000e+00 : f32
    %88 = vector.broadcast %cst_41 : f32 to vector<16x16xf32>
    %89 = arith.cmpf ogt, %87, %88 : vector<16x16xf32>
    %cst_42 = arith.constant 2.000000e-01 : f32
    %90 = vector.broadcast %cst_42 : f32 to vector<16x16xf32>
    %91 = arith.mulf %90, %87 : vector<16x16xf32>
    %92 = arith.select %89, %87, %91 : vector<16x16xi1>, vector<16x16xf32>
    %cst_43 = arith.constant -1.000000e+30 : f32
    %93 = vector.broadcast %cst_43 : f32 to vector<16x16xf32>
    %94 = arith.select %3, %92, %93 : vector<16x16xi1>, vector<16x16xf32>
    %cst_44 = arith.constant dense<0xFF800000> : vector<16xf32>
    %95 = vector.multi_reduction <maximumf>, %94, %cst_44 [1] : vector<16x16xf32> to vector<16xf32>
    %96 = vector.shape_cast %95 : vector<16xf32> to vector<16x1xf32>
    %97 = vector.broadcast %96 : vector<16x1xf32> to vector<16x16xf32>
    %98 = arith.subf %94, %97 : vector<16x16xf32>
    %99 = math.exp %98 : vector<16x16xf32>
    %cst_45 = arith.constant 0.000000e+00 : f32
    %100 = vector.broadcast %cst_45 : f32 to vector<16x16xf32>
    %101 = arith.select %3, %99, %100 : vector<16x16xi1>, vector<16x16xf32>
    %cst_46 = arith.constant dense<0.000000e+00> : vector<16xf32>
    %102 = vector.multi_reduction <add>, %101, %cst_46 [1] : vector<16x16xf32> to vector<16xf32>
    %103 = vector.shape_cast %102 : vector<16xf32> to vector<16x1xf32>
    %cst_47 = arith.constant 9.99999968E-21 : f32
    %104 = vector.broadcast %cst_47 : f32 to vector<16x1xf32>
    %105 = arith.maximumf %103, %104 : vector<16x1xf32>
    %106 = tpu.reciprocal %105 {approx = true} : vector<16x1xf32> -> vector<16x1xf32>
    %107 = vector.broadcast %106 : vector<16x1xf32> to vector<16x16xf32>
    %108 = arith.mulf %101, %107 : vector<16x16xf32>
    %cst_48 = arith.constant dense<0.000000e+00> : vector<16x8xf32>
    %109 = tpu.matmul %108, %79, %cst_48 {dimension_numbers = #tpu.dot_dimension_numbers<[1], [0], [0], [1], [0, 0, 1, 1], [], []>} : vector<16x16xf32>, vector<16x8xf32>, vector<16x8xf32> -> vector<16x8xf32>
    %c0_49 = arith.constant 0 : index
    %c0_50 = arith.constant 0 : index
    %110 = vector.load %arg10[%c0_49, %c0_50] : memref<1x8xf32, #tpu.memory_space<vmem>>, vector<1x8xf32>
    %111 = vector.broadcast %110 : vector<1x8xf32> to vector<16x8xf32>
    %112 = arith.addf %109, %111 : vector<16x8xf32>
    %c0_51 = arith.constant 0 : index
    %c0_52 = arith.constant 0 : index
    %113 = vector.load %arg11[%c0_51, %c0_52] : memref<2x16xf32, #tpu.memory_space<vmem>>, vector<2x16xf32>
    %cst_53 = arith.constant dense<0.000000e+00> : vector<2x8xf32>
    %114 = tpu.matmul %113, %112, %cst_53 {dimension_numbers = #tpu.dot_dimension_numbers<[1], [0], [0], [1], [0, 0, 1, 1], [], []>} : vector<2x16xf32>, vector<16x8xf32>, vector<2x8xf32> -> vector<2x8xf32>
    %c0_54 = arith.constant 0 : index
    %c0_55 = arith.constant 0 : index
    %115 = vector.load %arg12[%c0_54, %c0_55] : memref<2x8xf32, #tpu.memory_space<vmem>>, vector<2x8xf32>
    tpu.vector_store %arg12[%c0_54, %c0_55], %114 {strides = array<i32>} : memref<2x8xf32, #tpu.memory_space<vmem>>, vector<2x8xf32>,
    return
  }
  func.func @transform_0(%arg0: i32) -> (i32, i32) {
    %c0_i32 = arith.constant 0 : i32
    %c0_i32_0 = arith.constant 0 : i32
    %c0_i32_1 = arith.constant 0 : i32
    return %c0_i32, %c0_i32_0 : i32, i32
  }
  func.func @transform_1(%arg0: i32) -> (i32, i32) {
    %c0_i32 = arith.constant 0 : i32
    %c0_i32_0 = arith.constant 0 : i32
    %c0_i32_1 = arith.constant 0 : i32
    return %c0_i32, %c0_i32_0 : i32, i32
  }
  func.func @transform_2(%arg0: i32) -> (i32, i32) {
    %c0_i32 = arith.constant 0 : i32
    %c0_i32_0 = arith.constant 0 : i32
    %c0_i32_1 = arith.constant 0 : i32
    return %c0_i32, %c0_i32_0 : i32, i32
  }
  func.func @transform_3(%arg0: i32) -> (i32, i32) {
    %c0_i32 = arith.constant 0 : i32
    %c0_i32_0 = arith.constant 0 : i32
    %c0_i32_1 = arith.constant 0 : i32
    return %c0_i32, %c0_i32_0 : i32, i32
  }
  func.func @transform_4(%arg0: i32) -> (i32, i32) {
    %c0_i32 = arith.constant 0 : i32
    %c0_i32_0 = arith.constant 0 : i32
    %c0_i32_1 = arith.constant 0 : i32
    return %c0_i32, %c0_i32_0 : i32, i32
  }
  func.func @transform_5(%arg0: i32) -> (i32, i32) {
    %c0_i32 = arith.constant 0 : i32
    %c0_i32_0 = arith.constant 0 : i32
    %c0_i32_1 = arith.constant 0 : i32
    return %c0_i32, %c0_i32_0 : i32, i32
  }
  func.func @transform_6(%arg0: i32) -> (i32, i32) {
    %c0_i32 = arith.constant 0 : i32
    %c0_i32_0 = arith.constant 0 : i32
    %c0_i32_1 = arith.constant 0 : i32
    return %c0_i32, %c0_i32_0 : i32, i32
  }
  func.func @transform_7(%arg0: i32) -> (i32, i32) {
    %c0_i32 = arith.constant 0 : i32
    %c0_i32_0 = arith.constant 0 : i32
    %c0_i32_1 = arith.constant 0 : i32
    return %c0_i32, %c0_i32_0 : i32, i32
  }
  func.func @transform_8(%arg0: i32) -> (i32, i32) {
    %c0_i32 = arith.constant 0 : i32
    %c0_i32_0 = arith.constant 0 : i32
    %c0_i32_1 = arith.constant 0 : i32
    return %c0_i32, %c0_i32_0 : i32, i32
  }
  func.func @transform_9(%arg0: i32) -> (i32, i32) {
    %c0_i32 = arith.constant 0 : i32
    %c0_i32_0 = arith.constant 0 : i32
    %c0_i32_1 = arith.constant 0 : i32
    return %c0_i32, %c0_i32_0 : i32, i32
  }
  func.func @transform_10(%arg0: i32) -> (i32, i32) {
    %c0_i32 = arith.constant 0 : i32
    %c0_i32_0 = arith.constant 0 : i32
    %c0_i32_1 = arith.constant 0 : i32
    return %c0_i32, %c0_i32_0 : i32, i32
  }
  func.func @transform_11(%arg0: i32) -> (i32, i32) {
    %c0_i32 = arith.constant 0 : i32
    %c0_i32_0 = arith.constant 0 : i32
    %c0_i32_1 = arith.constant 0 : i32
    return %c0_i32, %c0_i32_0 : i32, i32
  }
}

</mosaic_0001>

<bundles_post_ra>
// kernel: tpu_custom_call.1
= control target key start
LH: loop header
LB: loop body
LE: loop exit
PB: predicated region body
PF: predicated region fallthrough
CT: control target
= control target key end

     0   :  { %vm46_vm0 = vcmask 64512   ;;  %s912_s0 = inlined_call_operand.vmem [shape: f32[16,8], index: 0, kind: input, shape index: {}]   ;;  %s913_s1 = inlined_call_operand.vmem [shape: f32[16,16], index: 1, kind: input, shape index: {}]   ;;  %s914_s2 = inlined_call_operand.vmem [shape: f32[8,16], index: 2, kind: input, shape index: {}]   ;;  %s915_s3 = inlined_call_operand.vmem [shape: f32[16,2], index: 3, kind: input, shape index: {}]   ;;  %s916_s4 = inlined_call_operand.vmem [shape: f32[16,2], index: 4, kind: input, shape index: {}]   ;;  %s917_s5 = inlined_call_operand.vmem [shape: f32[1,16], index: 5, kind: input, shape index: {}]   ;;  %s918_s6 = inlined_call_operand.vmem [shape: f32[16,8], index: 6, kind: input, shape index: {}]   ;;  %s919_s7 = inlined_call_operand.vmem [shape: f32[8,1], index: 7, kind: input, shape index: {}]   ;;  %s920_s8 = inlined_call_operand.vmem [shape: f32[8,1], index: 8, kind: input, shape index: {}]   ;;  %s921_s9 = inlined_call_operand.vmem [shape: f32[1,8], index: 9, kind: input, shape index: {}]   ;;  %s922_s10 = inlined_call_operand.vmem [shape: f32[2,16], index: 10, kind: input, shape index: {}]   ;;  %s923_s11 = inlined_call_operand.hbm [shape: f32[2,8], index: 11, kind: output, shape index: {}]  }
   0x1   :  { %v45_v0 = vld [vmem:[%s914_s2] sm:$0xff]  ;;  %v40_v2 = vld [vmem:[%s912_s0 + $0x8] sm:$0xff] }
   0x2   :  { %v39_v1 = vld [vmem:[%s912_s0] sm:$0xff]  ;;  %68 = vmatpush.msra.mxu0 %v45_v0  ;;  %647 = vmatpush.msra.mxu2 %v45_v0  ;;  %v77_v3 = vld [vmem:[%s915_s3 + $0x8] sm:$0xff] }
   0x3   :  { %v109_v4 = vld [vmem:[%s916_s4 + $0x8] sm:$0xff]  ;;  %626 = vmatmul.msk.f32.vlgmr.msra.gmra.mxu0 %vm46_vm0, %v39_v1  ;;  %627 = vmatmul.msk.f32.vlgmr.msra.gmra.mxu2 %vm46_vm0, %v40_v2 }
   0x4   :  { %16 = vsyncpa [#allocation3], 0  ;;  %99 = vmatpush.msra.mxu1 %v77_v3  ;;  %124 = vmatpush.msrb.mxu2 %v109_v4  ;;  %v76_v5 = vld [vmem:[%s915_s3] sm:$0xff]  ;;  %vm78_vm1 = vcmask 130048   ;;  %v720_v9 = vmov 1   ;;  %v721_v10 = vmov 0  }
   0x5   :  { %v108_v6 = vld [vmem:[%s916_s4] sm:$0xff]  ;;  %655 = vset.pattern.permute.xlu1 %v720_v9  ;;  %656 = vset.pattern.permute.xlu0 %v721_v10  ;;  %s722_s3 = smov 127   ;;  %v835_v34 = vld [vmem:[%s913_s1 + $0x8] sm:$0xff]  ;;  %s724_s13 = smov 8   ;;  %vm608_vm12 = vcmask 58368  }
   0x6   :  { %100 = vmatpush.msra.mxu1 %v76_v5  ;;  %125 = vmatpush.msrb.mxu2 %v108_v6  ;;  %v826_v23 = vld [vmem:[%s913_s1] sm:$0xff]  ;;  %vm44_vm6 = vcmp.gt.f32.partialorder %v835_v34, 0.0  ;;  %s723_s1 = smov 120   ;;  %s725_s24 = smov [#allocation2]  }
   0x7   :  { %vm43_vm2 = vcmp.gt.f32.partialorder %v826_v23, 0.0  ;;  %v665_v34 = vld [vmem:[%s921_s9] ss:$0 sm:$0xff]  ;;  %s615_s25 = sshll.u32 %s725_s24, 4  ;;  %s617_s27 = sshll.u32 %s923_s11, 4  ;;  %s616_s25 = int_to_ptr.vmem [resolvable:$true] %s615_s25  ;;  %s618_s27 = int_to_ptr.hbm [resolvable:$true] %s617_s27 }
  0x80   :  { %v809_v7 = vpop.f32.mrf.mxu0 }
  0x81   :  { %628 = vmatmul.msk.f32.vlgmr.msra.gmra.mxu1 %vm78_vm1, %v809_v7  ;;  %630 = vmatmul.msk.f32.vlgmr.msrb.gmra.mxu2 %vm78_vm1, %v809_v7 }
  0x86   :  { %v815_v8 = vpop.f32.mrf.mxu2 }
  0x87   :  { %232 = vmatpush.msra.mxu3 %v815_v8  ;;  %v658_v2 = vpack.i.bf16 %v809_v7, %v815_v8 }
  0x89   :  { %629 = vmatmul.msk.f32.gmra.mxu1 %vm78_vm1, %v815_v8  ;;  %631 = vmatmul.msk.f32.gmra.mxu2 %vm78_vm1, %v815_v8 }
  0x8a   :  { %233 = vmatpush.msra.mxu3 %v809_v7 }
  0xfe   :  { %v102_v11 = vpop.f32.mrf.mxu1 }
  0xff   :  { %243 = vrot.lane.b32.xlu0 %v102_v11, %s722_s3 }
 0x104   :  { %v127_v12 = vpop.f32.mrf.mxu2 }
 0x105   :  { %282 = vperm.xlu1 %655, %v127_v12  }
 0x106   :  { %v105_v13 = vpop.f32.mrf.mxu1 }
 0x107   :  { %245 = vrot.lane.b32.xlu0 %v105_v13, %s722_s3 }
 0x10c   :  { %v130_v14 = vpop.f32.mrf.mxu2 }
 0x10d   :  { %286 = vperm.xlu1 %655, %v130_v14  }
 0x10f   :  { %167 = vperm.xlu0 %656, %v127_v12  }
 0x115   :  { %657 = vset.pattern.permute.xlu1 %v721_v10 }
 0x116   :  { %172 = vperm.xlu1 %657, %v130_v14  }
 0x14b   :  { %133 = vxpose.xlu1.b32.start [1/2] (short) (narrow) %v102_v11, 8 }
 0x153   :  { %134 = vxpose.xlu1.b32.end [2/2] (short) (narrow) %v105_v13, 8 }
 0x171   :  { %v244_v15 = vpop.permute.xlu0 %243 }
 0x172   :  { %249 = vxpose.xlu2.b32.start [1/2] (short) (narrow) %v244_v15, 8 }
 0x177   :  { %v283_v17 = vpop.permute.xlu1 %282 }
 0x179   :  { %v246_v16 = vpop.permute.xlu0 %245 }
 0x17a   :  { %250 = vxpose.xlu2.b32.end [2/2] (short) (narrow) %v246_v16, 8 }
 0x17f   :  { %v287_v18 = vpop.permute.xlu1 %286 }
 0x181   :  { %v168_v22 = vpop.permute.xlu0 %167 }
 0x188   :  { %v173_v19 = vpop.permute.xlu1 %172 }
 0x1dc   :  { %663 = vset.pattern.permute.xlu2 %v721_v10 }
 0x1ef   :  { %v149_v20 = vpop.trf.xlu1 }
 0x1f0   :  { %v175_v21 = vperm.slane %v149_v20, 0 }
 0x1f2   :  { %v176_v24 = vadd.f32 %v175_v21, %v168_v22  ;;  %v177_v31 = vadd.f32 %v175_v21, %v173_v19 }
 0x1f4   :  { %vm178_vm3 = vcmp.gt.f32.partialorder %v176_v24, 0.0  ;;  %v180_v25 = vmul.f32 0.2, %v176_v24  ;;  %v181_v39 = vmul.f32 0.2, %v177_v31  ;;  %vm179_vm7 = vcmp.gt.f32.partialorder %v177_v31, 0.0 }
 0x1f6   :  { %v182_v26 = vsel %vm178_vm3, %v176_v24, %v180_v25  ;;  %v183_v44 = vsel %vm179_vm7, %v177_v31, %v181_v39  ;;  %v387_v31 = vld [vmem:[%s918_s6] sm:$0xff] }
 0x1f7   :  { %v184_v27 = vsel %vm43_vm2, %v182_v26, -1e+30  ;;  %v185_v45 = vsel %vm44_vm6, %v183_v44, -1e+30 }
 0x1f8   :  { %v186_v28 = vsel %vm78_vm1, %v184_v27, -inf  ;;  %v189_v46 = vsel %vm78_vm1, %v185_v45, -inf }
 0x1f9   :  { %187 = vmax.xlane.f32.xlu0 %v186_v28 }
 0x20b   :  { %v265_v29 = vpop.trf.xlu2 }
 0x20c   :  { %v289_v30 = vperm.slane %v265_v29, 0 }
 0x20e   :  { %v290_v32 = vadd.f32 %v289_v30, %v283_v17  ;;  %v291_v33 = vadd.f32 %v289_v30, %v287_v18  ;;  %v388_v30 = vld [vmem:[%s918_s6 + $0x8] sm:$0xff] }
 0x20f   :  { %409 = vmatpush.msrb.mxu1 %v388_v30 }
 0x210   :  { %vm292_vm4 = vcmp.gt.f32.partialorder %v290_v32, 0.0  ;;  %v294_v35 = vmul.f32 0.2, %v290_v32  ;;  %vm293_vm5 = vcmp.gt.f32.partialorder %v291_v33, 0.0  ;;  %v295_v36 = vmul.f32 0.2, %v291_v33 }
 0x211   :  { %410 = vmatpush.msrb.mxu1 %v387_v31 }
 0x212   :  { %v296_v37 = vsel %vm292_vm4, %v290_v32, %v294_v35  ;;  %v297_v38 = vsel %vm293_vm5, %v291_v33, %v295_v36  ;;  %v664_v32 = vld [vmem:[%s917_s5] ss:$0 sm:$0xff] }
 0x213   :  { %v298_v40 = vsel %vm43_vm2, %v296_v37, -1e+30  ;;  %v299_v41 = vsel %vm44_vm6, %v297_v38, -1e+30 }
 0x214   :  { %v300_v42 = vsel %vm78_vm1, %v298_v40, -inf  ;;  %v303_v43 = vsel %vm78_vm1, %v299_v41, -inf }
 0x215   :  { %301 = vmax.xlane.f32.xlu2 %v300_v42  ;;  %304 = vmax.xlane.f32.xlu0 %v303_v43 }
 0x21d   :  { %190 = vmax.xlane.f32.xlu0 %v189_v46 }
 0x26c   :  { %v188_v47 = vpop.xlane.xlu0 %187 }
 0x26d   :  { %v192_v3 = vsub.f32 %v184_v27, %v188_v47 }
 0x26f   :  { %v194_v4 = vmul.f32 1.442695, %v192_v3 }
 0x288   :  { %v302_v48 = vpop.xlane.xlu2 %301  ;;  %v305_v49 = vpop.xlane.xlu0 %304 }
 0x289   :  { %v306_v50 = vsub.f32 %v298_v40, %v302_v48  ;;  %v307_v51 = vsub.f32 %v299_v41, %v305_v49 }
 0x28b   :  { %v308_v52 = vmul.f32 1.442695, %v306_v50  ;;  %v310_v53 = vmul.f32 1.442695, %v307_v51  ;;  %v418_v50 = vld [vmem:[%s919_s7] sm:$0xff] }
 0x28c   :  { %v448_v51 = vld [vmem:[%s920_s8] sm:$0xff]  ;;  %440 = vmatpush.msra.mxu2 %v418_v50 }
 0x28d   :  { %666 = vpow2.f32 %v308_v52  ;;  %464 = vmatpush.msrb.mxu3 %v448_v51 }
 0x28e   :  { %668 = vpow2.f32 %v310_v53 }
 0x290   :  { %v191_v54 = vpop.xlane.xlu0 %190 }
 0x291   :  { %v193_v55 = vsub.f32 %v185_v45, %v191_v54 }
 0x293   :  { %v667_v56 = vpop.eup %666  ;;  %v196_v57 = vmul.f32 1.442695, %v193_v55 }
 0x294   :  { %v669_v58 = vpop.eup %668  ;;  %v312_v59 = vsel %vm43_vm2, %v667_v56, 0.0 }
 0x295   :  { %670 = vpow2.f32 %v196_v57  ;;  %v314_v60 = vsel %vm78_vm1, %v312_v59, 0.0  ;;  %v313_v61 = vsel %vm44_vm6, %v669_v58, 0.0 }
 0x296   :  { %315 = vadd.xlane.f32.xlu1 %v314_v60  ;;  %v317_v62 = vsel %vm78_vm1, %v313_v61, 0.0  ;;  %672 = vpow2.f32 %v194_v4 }
 0x297   :  { %318 = vadd.xlane.f32.xlu0 %v317_v62 }
 0x29b   :  { %v671_v63 = vpop.eup %670 }
 0x29c   :  { %v199_v0 = vsel %vm44_vm6, %v671_v63, 0.0  ;;  %v673_v5 = vpop.eup %672 }
 0x29d   :  { %v203_v1 = vsel %vm78_vm1, %v199_v0, 0.0  ;;  %v198_v6 = vsel %vm43_vm2, %v673_v5, 0.0 }
 0x29e   :  { %204 = vadd.xlane.f32.xlu2 %v203_v1  ;;  %v200_v9 = vsel %vm78_vm1, %v198_v6, 0.0 }
 0x2ab   :  { %659 = vrot.lane.b32.xlu0 %v658_v2, %s723_s1 }
 0x2d5   :  { %201 = vadd.xlane.f32.xlu0 %v200_v9 }
 0x309   :  { %v316_v10 = vpop.xlane.xlu1 %315 }
 0x30a   :  { %v320_v11 = vmax.f32 %v316_v10, 1e-20  ;;  %v319_v12 = vpop.xlane.xlu0 %318 }
 0x30b   :  { %v321_v13 = vmax.f32 %v319_v12, 1e-20 }
 0x30c   :  { %674 = vrcp.f32 %v320_v11 }
 0x30d   :  { %676 = vrcp.f32 %v321_v13 }
 0x311   :  { %v205_v21 = vpop.xlane.xlu2 %204 }
 0x312   :  { %v675_v15 = vpop.eup %674  ;;  %v207_v22 = vmax.f32 %v205_v21, 1e-20 }
 0x313   :  { %v324_v16 = vmul.f32 %v675_v15, %v312_v59  ;;  %v677_v17 = vpop.eup %676 }
 0x314   :  { %v325_v18 = vmul.f32 %v677_v17, %v313_v61 }
 0x31d   :  { %v660_v14 = vpop.permute.xlu0 %659 }
 0x31e   :  { %v661_v7 = vunpack.i.l.bf16 %v660_v14  ;;  %v662_v8 = vunpack.i.h.bf16 %v660_v14 }
 0x320   :  { %352 = vmatpush.msrb.mxu0 %v661_v7 }
 0x322   :  { %353 = vmatpush.msrb.mxu0 %v662_v8 }
 0x323   :  { %634 = vmatmul.msk.f32.vlgmr.msrb.gmra.mxu0 %vm78_vm1, %v324_v16 }
 0x32b   :  { %635 = vmatmul.msk.f32.gmra.mxu0 %vm78_vm1, %v325_v18 }
 0x348   :  { %v202_v19 = vpop.xlane.xlu0 %201 }
 0x349   :  { %v206_v20 = vmax.f32 %v202_v19, 1e-20 }
 0x34b   :  { %678 = vrcp.f32 %v206_v20 }
 0x34c   :  { %680 = vrcp.f32 %v207_v22 }
 0x351   :  { %v679_v24 = vpop.eup %678 }
 0x352   :  { %v210_v25 = vmul.f32 %v679_v24, %v198_v6  ;;  %v681_v26 = vpop.eup %680 }
 0x353   :  { %v211_v27 = vmul.f32 %v681_v26, %v199_v0 }
 0x354   :  { %632 = vmatmul.msk.f32.vlgmr.msra.gmra.mxu3 %vm78_vm1, %v210_v25 }
 0x35c   :  { %633 = vmatmul.msk.f32.gmra.mxu3 %vm78_vm1, %v211_v27 }
 0x3a0   :  { %v355_v28 = vpop.f32.mrf.mxu0 }
 0x3a1   :  { %363 = vrot.lane.b32.xlu2 %v355_v28, %s724_s13 }
 0x3a8   :  { %v358_v29 = vpop.f32.mrf.mxu0 }
 0x3a9   :  { %365 = vrot.lane.b32.xlu0 %v358_v29, %s724_s13 }
 0x3d7   :  { %v235_v33 = vpop.f32.mrf.mxu3 }
 0x3df   :  { %v238_v42 = vpop.f32.mrf.mxu3 }
 0x3fb   :  { %v364_v35 = vpop.permute.xlu2 %363 }
 0x3fc   :  { %v369_v36 = vsel %vm46_vm0, %v235_v33, %v364_v35 }
 0x3fd   :  { %v375_v37 = vadd.f32 %v664_v32, %v369_v36 }
 0x3ff   :  { %v379_v38 = vmul.f32 1.442695, %v375_v37  ;;  %vm377_vm8 = vcmp.gt.f32.partialorder %v375_v37, 0.0 }
 0x401   :  { %682 = vpow2.f32 %v379_v38 }
 0x407   :  { %v683_v39 = vpop.eup %682 }
 0x408   :  { %v636_v40 = vadd.f32 -1.0, %v683_v39 }
 0x40a   :  { %v385_v41 = vsel %vm377_vm8, %v375_v37, %v636_v40 }
 0x40b   :  { %638 = vmatmul.msk.f32.vlgmr.msrb.gmra.mxu1 %vm78_vm1, %v385_v41 }
 0x41b   :  { %v366_v43 = vpop.permute.xlu0 %365 }
 0x41c   :  { %v370_v44 = vsel %vm46_vm0, %v238_v42, %v366_v43 }
 0x41d   :  { %v376_v45 = vadd.f32 %v664_v32, %v370_v44  ;;  %v584_v32 = vld [vmem:[%s922_s10] sm:$0x3] }
 0x41f   :  { %v381_v46 = vmul.f32 1.442695, %v376_v45  ;;  %vm378_vm9 = vcmp.gt.f32.partialorder %v376_v45, 0.0 }
 0x421   :  { %684 = vpow2.f32 %v381_v46 }
 0x427   :  { %v685_v47 = vpop.eup %684 }
 0x428   :  { %v637_v48 = vadd.f32 -1.0, %v685_v47 }
 0x42a   :  { %v386_v49 = vsel %vm378_vm9, %v376_v45, %v637_v48 }
 0x42b   :  { %639 = vmatmul.msk.f32.gmra.mxu1 %vm78_vm1, %v386_v49 }
 0x488   :  { %v412_v52 = vpop.f32.mrf.mxu1 }
 0x489   :  { %640 = vmatmul.msk.f32.vlgmr.msra.gmra.mxu2 %vm46_vm0, %v412_v52  ;;  %642 = vmatmul.msk.f32.vlgmr.msrb.gmra.mxu3 %vm46_vm0, %v412_v52 }
 0x4a8   :  { %v415_v53 = vpop.f32.mrf.mxu1 }
 0x4a9   :  { %641 = vmatmul.msk.f32.gmra.mxu2 %vm46_vm0, %v415_v53  ;;  %643 = vmatmul.msk.f32.gmra.mxu3 %vm46_vm0, %v415_v53 }
 0x4aa   :  { %575 = vmatpush.msra.mxu0 %v415_v53 }
 0x4ac   :  { %576 = vmatpush.msra.mxu0 %v412_v52 }
 0x50c   :  { %v466_v54 = vpop.f32.mrf.mxu3  ;;  %v442_v56 = vpop.f32.mrf.mxu2 }
 0x50d   :  { %506 = vperm.xlu2 %663, %v466_v54  }
 0x52c   :  { %v469_v55 = vpop.f32.mrf.mxu3  ;;  %v445_v57 = vpop.f32.mrf.mxu2 }
 0x52d   :  { %511 = vperm.xlu2 %663, %v469_v55  }
 0x553   :  { %472 = vxpose.xlu2.b32.start [1/2] (short) (narrow) %v442_v56, 8 }
 0x55b   :  { %473 = vxpose.xlu2.b32.end [2/2] (short) (narrow) %v445_v57, 8 }
 0x567   :  { %v507_v58 = vpop.permute.xlu2 %506 }
 0x587   :  { %v512_v59 = vpop.permute.xlu2 %511 }
 0x5ec   :  { %v488_v60 = vpop.trf.xlu2 }
 0x5ed   :  { %v514_v61 = vperm.slane %v488_v60, 0 }
 0x5ef   :  { %v515_v62 = vadd.f32 %v514_v61, %v507_v58  ;;  %v516_v63 = vadd.f32 %v514_v61, %v512_v59 }
 0x5f1   :  { %v519_v0 = vmul.f32 0.2, %v515_v62  ;;  %v520_v1 = vmul.f32 0.2, %v516_v63  ;;  %vm518_vm10 = vcmp.gt.f32.partialorder %v516_v63, 0.0  ;;  %vm517_vm11 = vcmp.gt.f32.partialorder %v515_v62, 0.0 }
 0x5f3   :  { %v522_v2 = vsel %vm518_vm10, %v516_v63, %v520_v1  ;;  %v521_v3 = vsel %vm517_vm11, %v515_v62, %v519_v0 }
 0x5f4   :  { %v524_v4 = vsel %vm44_vm6, %v522_v2, -1e+30  ;;  %v523_v5 = vsel %vm43_vm2, %v521_v3, -1e+30 }
 0x5f5   :  { %v528_v6 = vsel %vm78_vm1, %v524_v4, -inf  ;;  %v525_v9 = vsel %vm78_vm1, %v523_v5, -inf }
 0x5f6   :  { %529 = vmax.xlane.f32.xlu1 %v528_v6  ;;  %526 = vmax.xlane.f32.xlu0 %v525_v9 }
 0x669   :  { %v530_v10 = vpop.xlane.xlu1 %529  ;;  %v527_v11 = vpop.xlane.xlu0 %526 }
 0x66a   :  { %v531_v12 = vsub.f32 %v523_v5, %v527_v11  ;;  %v532_v13 = vsub.f32 %v524_v4, %v530_v10 }
 0x66c   :  { %v533_v14 = vmul.f32 1.442695, %v531_v12  ;;  %v535_v15 = vmul.f32 1.442695, %v532_v13 }
 0x66e   :  { %686 = vpow2.f32 %v533_v14 }
 0x66f   :  { %688 = vpow2.f32 %v535_v15 }
 0x674   :  { %v687_v7 = vpop.eup %686 }
 0x675   :  { %v537_v8 = vsel %vm43_vm2, %v687_v7, 0.0  ;;  %v689_v17 = vpop.eup %688 }
 0x676   :  { %v539_v16 = vsel %vm78_vm1, %v537_v8, 0.0  ;;  %v538_v18 = vsel %vm44_vm6, %v689_v17, 0.0 }
 0x677   :  { %540 = vadd.xlane.f32.xlu1 %v539_v16  ;;  %v542_v19 = vsel %vm78_vm1, %v538_v18, 0.0 }
 0x67f   :  { %543 = vadd.xlane.f32.xlu1 %v542_v19 }
 0x6ea   :  { %v541_v20 = vpop.xlane.xlu1 %540 }
 0x6eb   :  { %v545_v21 = vmax.f32 %v541_v20, 1e-20 }
 0x6ed   :  { %690 = vrcp.f32 %v545_v21 }
 0x6f2   :  { %v544_v22 = vpop.xlane.xlu1 %543 }
 0x6f3   :  { %v691_v24 = vpop.eup %690  ;;  %v546_v25 = vmax.f32 %v544_v22, 1e-20 }
 0x6f4   :  { %v549_v26 = vmul.f32 %v691_v24, %v537_v8 }
 0x6f5   :  { %692 = vrcp.f32 %v546_v25 }
 0x6f6   :  { %644 = vmatmul.msk.f32.vlgmr.msra.gmra.mxu0 %vm78_vm1, %v549_v26 }
 0x6fb   :  { %v693_v23 = vpop.eup %692 }
 0x6fc   :  { %v550_v27 = vmul.f32 %v693_v23, %v538_v18 }
 0x6fe   :  { %645 = vmatmul.msk.f32.gmra.mxu0 %vm78_vm1, %v550_v27 }
 0x773   :  { %v578_v28 = vpop.f32.mrf.mxu0 }
 0x774   :  { %v579_v31 = vadd.f32 %v665_v34, %v578_v28 }
 0x77b   :  { %v581_v29 = vpop.f32.mrf.mxu0 }
 0x77c   :  { %v582_v30 = vadd.f32 %v665_v34, %v581_v29 }
 0x77e   :  { %602 = vmatpush.msra.mxu1 %v582_v30 }
 0x780   :  { %603 = vmatpush.msra.mxu1 %v579_v31 }
 0x781   :  { %646 = vmatmul.msk.f32.vlgmr.msra.gmra.mxu1 %vm78_vm1, %v584_v32 }
 0x7fe   :  { %v605_v33 = vpop.f32.mrf.mxu1 }
 0x7ff   :  { %609 = vst.msk [vmem:[#allocation2] sm:$0x3] %vm608_vm12, %v605_v33 }
 0x800   :  { %620 = dma.vmem_to_hbm [thread:$0]  %s616_s25, 32, %s618_s27, [#allocation3]  }
 0x801   :  { %718 = dma.done.wait [#allocation3], 32  }
 0x802   :  { %719 = vsyncadd [#allocation3], 4294967264 }
 0x803   :  { %625 = vsyncpa [#allocation3], 1 }

</bundles_post_ra>
